<compile_context>
chip_gen: v5e
topology: v5e:2x2
jax: 0.10.0
libtpu: 0.0.40
codegen_flags: <defaults>
</compile_context>

<pallas_src>
import functools

import jax
import jax.numpy as jnp
from jax.experimental import pallas as pl
from jax.experimental.pallas import tpu as pltpu


# ------------------------------ tiling helpers ------------------------------

def _round_up(x, m):
    return ((x + m - 1) // m) * m


def _sublane(dtype):
    """Sublane multiple for a dtype: 8 (f32), 16 (bf16), 32 (int8/fp8)."""
    return max(8, 32 // jnp.dtype(dtype).itemsize)


def _vmem_capacity_bytes():
    try:
        info = pltpu.get_tpu_info()
    except Exception:
        return 64 << 20
    for name in ("vmem_capacity_bytes", "vmem_size_bytes", "vmem_bytes"):
        val = getattr(info, name, None)
        if val:
            return int(val)
    return 64 << 20  # conservative default (v7x per-core VMEM)


def _budgets():
    """(per-block byte target, scoped VMEM limit) sized per TPU generation."""
    vmem = _vmem_capacity_bytes()
    # input + output are each double-buffered -> ~4x block bytes of pipeline
    # VMEM.  48 MiB leaves headroom on v7x (64 MiB physical) while raising the
    # small default scoped limits on v5e (16 MiB) / v6e (32 MiB).
    vmem_limit = int(min(vmem * 3 // 4, 48 << 20))
    block_target = max(1 << 20, min(4 << 20, vmem_limit // 12))
    return block_target, vmem_limit


def _pick_row_tile(rows, lane_width, itemsize, sublane, target_bytes):
    """Row tile (second-to-last dim) for a (rows, lane_width) array."""
    if rows <= sublane:
        return rows
    tm = target_bytes // max(1, itemsize * lane_width)
    tm = max(sublane, (tm // sublane) * sublane)
    if tm >= rows:
        # Whole array would fit in one block: split it so both v7x TensorCores
        # get work and the BlockSpec pipeline has more than one step.
        tm = _round_up(pl.cdiv(rows, 2), sublane)
    return min(tm, rows)


def _pick_lane_tile(length, bytes_per_lane, target_bytes, want_split):
    """Lane tile (last dim, multiple of 128) for the flattened H*W axis."""
    if length <= 128:
        return length
    tl = target_bytes // max(1, bytes_per_lane)
    tl = max(128, (tl // 128) * 128)
    if tl >= length:
        if not want_split:
            return length
        tl = _round_up(pl.cdiv(length, 2), 128)
    return min(tl, length)


# --------------------------------- kernels ----------------------------------

def _seg_sum(v, m):
    # Segmented lane-sum via the (idle) MXU: one dot against a block-diagonal
    # ones matrix yields per-segment sums already broadcast across each
    # segment's lanes.  hi/lo bf16 split keeps the result f32-accurate
    # independent of MXU input rounding.
    hi = v.astype(jnp.bfloat16).astype(jnp.float32)
    lo = v - hi
    return (jnp.dot(hi, m, preferred_element_type=jnp.float32) +
            jnp.dot(lo, m, preferred_element_type=jnp.float32))


def _ln_cl_kernel(x_ref, w_ref, b_ref, o_ref, *, eps, inv_c):
    # channels_last, plain layout: x_ref (tm, C); w/b (1, C).
    x = x_ref[...].astype(jnp.float32)
    mean = jnp.sum(x, axis=-1, keepdims=True) * inv_c
    d = x - mean
    var = jnp.sum(d * d, axis=-1, keepdims=True) * inv_c
    inv = jax.lax.rsqrt(var + eps)
    y = d * inv * w_ref[...].astype(jnp.float32) + b_ref[...].astype(jnp.float32)
    o_ref[...] = y.astype(o_ref.dtype)


def _ln_cl_packed_kernel(x_ref, w_ref, b_ref, m_ref, o_ref, *, eps, inv_c):
    # channels_last, lane-packed layout: x_ref (tm, 128) holds G = 128 // C
    # spatial positions per vreg row; w/b are (1, 128) (weight tiled G times);
    # m_ref (128, 128) is a constant block-diagonal ones matrix.
    x = x_ref[...].astype(jnp.float32)
    m = m_ref[...]
    mean = _seg_sum(x, m) * inv_c
    d = x - mean
    var = _seg_sum(d * d, m) * inv_c
    inv = jax.lax.rsqrt(var + eps)
    y = d * inv * w_ref[...].astype(jnp.float32) + b_ref[...].astype(jnp.float32)
    o_ref[...] = y.astype(o_ref.dtype)


def _ln_cf_kernel(x_ref, w_ref, b_ref, o_ref, *, eps, inv_c):
    # channels_first, spatially flattened: x_ref (1, C, tl); w/b (1, C, 1).
    # Reduction runs over the channel (sublane-side) axis; lanes stay dense.
    x = x_ref[...].astype(jnp.float32)
    mean = jnp.sum(x, axis=1, keepdims=True) * inv_c
    d = x - mean
    var = jnp.sum(d * d, axis=1, keepdims=True) * inv_c
    inv = jax.lax.rsqrt(var + eps)
    y = d * inv * w_ref[...].astype(jnp.float32) + b_ref[...].astype(jnp.float32)
    o_ref[...] = y.astype(o_ref.dtype)


# --------------------------------- wrappers ----------------------------------

def _channels_last_impl(x, weight, bias, eps):
    orig_shape = x.shape
    C = orig_shape[-1]
    x2 = x.reshape(-1, C)
    P = x2.shape[0]
    itemsize = jnp.dtype(x.dtype).itemsize
    sublane = _sublane(x.dtype)
    block_target, vmem_limit = _budgets()

    G = 128 // C if (0 < C < 128 and 128 % C == 0) else 1
    use_packed = G > 1 and P % G == 0

    cparams = pltpu.CompilerParams(
        dimension_semantics=("parallel",), vmem_limit_bytes=vmem_limit)
    cost = pl.CostEstimate(
        flops=10 * x.size + (8 * (P // G) * 128 * 128 if use_packed else 0),
        transcendentals=x.size,
        bytes_accessed=2 * x.size * itemsize + 2 * C * 4)

    if use_packed:
        L = G * C                              # == 128, fully lane-dense
        rows = P // G
        xg = x2.reshape(rows, L)
        w_packed = jnp.tile(weight.reshape(1, C), (1, G))
        b_packed = jnp.tile(bias.reshape(1, C), (1, G))
        lane = jnp.arange(L, dtype=jnp.int32)
        m = (lane[:, None] // C == lane[None, :] // C).astype(jnp.float32)
        tm = _pick_row_tile(rows, L, itemsize, sublane, block_target)
        out = pl.pallas_call(
            functools.partial(_ln_cl_packed_kernel, eps=eps, inv_c=1.0 / C),
            out_shape=jax.ShapeDtypeStruct((rows, L), x.dtype),
            grid=(pl.cdiv(rows, tm),),
            in_specs=[
                pl.BlockSpec((tm, L), lambda i: (i, 0)),
                pl.BlockSpec((1, L), lambda i: (0, 0)),
                pl.BlockSpec((1, L), lambda i: (0, 0)),
                pl.BlockSpec((L, L), lambda i: (0, 0)),
            ],
            out_specs=pl.BlockSpec((tm, L), lambda i: (i, 0)),
            compiler_params=cparams,
            cost_estimate=cost,
        )(xg, w_packed, b_packed, m)
        return out.reshape(P, C).reshape(orig_shape)

    # Fallback: C is already lane-dense (>=128) or does not pack evenly.
    tm = _pick_row_tile(P, C, itemsize, sublane, block_target)
    out = pl.pallas_call(
        functools.partial(_ln_cl_kernel, eps=eps, inv_c=1.0 / C),
        out_shape=jax.ShapeDtypeStruct((P, C), x.dtype),
        grid=(pl.cdiv(P, tm),),
        in_specs=[
            pl.BlockSpec((tm, C), lambda i: (i, 0)),
            pl.BlockSpec((1, C), lambda i: (0, 0)),
            pl.BlockSpec((1, C), lambda i: (0, 0)),
        ],
        out_specs=pl.BlockSpec((tm, C), lambda i: (i, 0)),
        compiler_params=cparams,
        cost_estimate=cost,
    )(x2, weight.reshape(1, C), bias.reshape(1, C))
    return out.reshape(orig_shape)


def _channels_first_impl(x, weight, bias, eps):
    N, C, H, W = x.shape
    HW = H * W
    itemsize = jnp.dtype(x.dtype).itemsize
    block_target, vmem_limit = _budgets()

    x3 = x.reshape(N, C, HW)                   # H*W onto the 128-lane axis
    tl = _pick_lane_tile(HW, itemsize * C, block_target, want_split=(N == 1))
    grid = (N, pl.cdiv(HW, tl))

    out = pl.pallas_call(
        functools.partial(_ln_cf_kernel, eps=eps, inv_c=1.0 / C),
        out_shape=jax.ShapeDtypeStruct((N, C, HW), x.dtype),
        grid=grid,
        in_specs=[
            pl.BlockSpec((1, C, tl), lambda n, j: (n, 0, j)),
            pl.BlockSpec((1, C, 1), lambda n, j: (0, 0, 0)),
            pl.BlockSpec((1, C, 1), lambda n, j: (0, 0, 0)),
        ],
        out_specs=pl.BlockSpec((1, C, tl), lambda n, j: (n, 0, j)),
        compiler_params=pltpu.CompilerParams(
            dimension_semantics=("parallel", "parallel"),
            vmem_limit_bytes=vmem_limit),
        cost_estimate=pl.CostEstimate(
            flops=10 * x.size, transcendentals=N * HW,
            bytes_accessed=2 * x.size * itemsize + 2 * C * 4),
    )(x3, weight.reshape(1, C, 1), bias.reshape(1, C, 1))
    return out.reshape(N, C, H, W)


@functools.partial(jax.jit, static_argnames=("eps", "data_format"))
def layer_norm(x, weight, bias, *, eps=1e-6, data_format="channels_last"):
    """Forward pass of the PyTorch LayerNorm module (both data formats)."""
    if data_format == "channels_last":
        return _channels_last_impl(x, weight, bias, eps)
    if data_format == "channels_first":
        return _channels_first_impl(x, weight, bias, eps)
    raise NotImplementedError(data_format)


# ----------------------------------- main ------------------------------------
if __name__ == "__main__":
    key = jax.random.PRNGKey(0)
    k1, k2, k3, k4, k5, k6, k7 = jax.random.split(key, 7)

    eps = 1e-6

    def ref_channels_first(x, w, b):
        u = jnp.mean(x, axis=1, keepdims=True)
        s = jnp.mean((x - u) ** 2, axis=1, keepdims=True)
        xn = (x - u) / jnp.sqrt(s + eps)
        return w[None, :, None, None] * xn + b[None, :, None, None]

    def ref_channels_last(x, w, b):
        u = jnp.mean(x, axis=-1, keepdims=True)
        s = jnp.mean((x - u) ** 2, axis=-1, keepdims=True)
        return (x - u) / jnp.sqrt(s + eps) * w + b

    # Shapes consistent with the module: N=2, C=4, H=W=16.
    N, C, H, W = 2, 4, 16, 16
    weight = 1.0 + 0.1 * jax.random.normal(k1, (C,), jnp.float32)
    bias = 0.1 * jax.random.normal(k2, (C,), jnp.float32)
    x_cf = jax.random.normal(k3, (N, C, H, W), jnp.float32)   # channels_first
    x_cl = jax.random.normal(k4, (N, H, W, C), jnp.float32)   # channels_last

    y_cf = jax.block_until_ready(
        layer_norm(x_cf, weight, bias, eps=eps, data_format="channels_first"))
    y_cl = jax.block_until_ready(
        layer_norm(x_cl, weight, bias, eps=eps, data_format="channels_last"))

    assert y_cf.shape == x_cf.shape and y_cf.dtype == x_cf.dtype
    assert y_cl.shape == x_cl.shape and y_cl.dtype == x_cl.dtype
    assert bool(jnp.isfinite(y_cf).all()) and bool(jnp.isfinite(y_cl).all())
    assert jnp.allclose(y_cf, ref_channels_first(x_cf, weight, bias),
                        atol=5e-5, rtol=5e-5)
    assert jnp.allclose(y_cl, ref_channels_last(x_cl, weight, bias),
                        atol=5e-5, rtol=5e-5)

    # Also exercise the non-packed channels_last fallback (C does not divide 128).
    C2 = 96
    w2 = 1.0 + 0.1 * jax.random.normal(k5, (C2,), jnp.float32)
    b2 = 0.1 * jax.random.normal(k6, (C2,), jnp.float32)
    x2 = jax.random.normal(k7, (2, 4, 4, C2), jnp.float32)
    y2 = jax.block_until_ready(
        layer_norm(x2, w2, b2, eps=eps, data_format="channels_last"))
    assert jnp.allclose(y2, ref_channels_last(x2, w2, b2), atol=5e-5, rtol=5e-5)

    print("KERNEL_OK")
</pallas_src>

<mosaic_0001>
module attributes {stable_mosaic.version = 11 : i64} {
  func.func @_ln_cf_kernel(%arg0: i32, %arg1: i32, %arg2: memref<1x4x256xf32, #tpu.memory_space<vmem>>, %arg3: memref<1x4x1xf32, #tpu.memory_space<vmem>>, %arg4: memref<1x4x1xf32, #tpu.memory_space<vmem>>, %arg5: memref<1x4x256xf32, #tpu.memory_space<vmem>>) attributes {dimension_semantics = [#tpu.dimension_semantics<parallel>, #tpu.dimension_semantics<parallel>], iteration_bounds = array<i64: 2, 1>, scalar_prefetch = 0 : i64, scratch_operands = 0 : i64, tpu.core_type = #tpu.core_type<tc>, window_params = [{transform_indices = @transform_0, window_bounds = array<i64: 1, 4, 256>}, {pipeline_mode = #tpu.pipeline_mode<synchronous>, transform_indices = @transform_1, window_bounds = array<i64: 1, 4, 1>}, {pipeline_mode = #tpu.pipeline_mode<synchronous>, transform_indices = @transform_2, window_bounds = array<i64: 1, 4, 1>}, {transform_indices = @transform_3, window_bounds = array<i64: 1, 4, 256>}]} {
    %c0 = arith.constant 0 : index
    %c0_0 = arith.constant 0 : index
    %c0_1 = arith.constant 0 : index
    %0 = vector.load %arg2[%c0, %c0_0, %c0_1] : memref<1x4x256xf32, #tpu.memory_space<vmem>>, vector<1x4x256xf32>
    %cst = arith.constant dense<0.000000e+00> : vector<1x256xf32>
    %1 = vector.multi_reduction <add>, %0, %cst [1] : vector<1x4x256xf32> to vector<1x256xf32>
    %2 = vector.shape_cast %1 : vector<1x256xf32> to vector<1x1x256xf32>
    %cst_2 = arith.constant 2.500000e-01 : f32
    %3 = vector.broadcast %cst_2 : f32 to vector<1x1x256xf32>
    %4 = arith.mulf %2, %3 : vector<1x1x256xf32>
    %5 = vector.broadcast %4 : vector<1x1x256xf32> to vector<1x4x256xf32>
    %6 = arith.subf %0, %5 : vector<1x4x256xf32>
    %7 = arith.mulf %6, %6 : vector<1x4x256xf32>
    %cst_3 = arith.constant dense<0.000000e+00> : vector<1x256xf32>
    %8 = vector.multi_reduction <add>, %7, %cst_3 [1] : vector<1x4x256xf32> to vector<1x256xf32>
    %9 = vector.shape_cast %8 : vector<1x256xf32> to vector<1x1x256xf32>
    %cst_4 = arith.constant 2.500000e-01 : f32
    %10 = vector.broadcast %cst_4 : f32 to vector<1x1x256xf32>
    %11 = arith.mulf %9, %10 : vector<1x1x256xf32>
    %cst_5 = arith.constant 9.99999997E-7 : f32
    %12 = vector.broadcast %cst_5 : f32 to vector<1x1x256xf32>
    %13 = arith.addf %11, %12 : vector<1x1x256xf32>
    %14 = math.rsqrt %13 : vector<1x1x256xf32>
    %15 = vector.broadcast %14 : vector<1x1x256xf32> to vector<1x4x256xf32>
    %16 = arith.mulf %6, %15 : vector<1x4x256xf32>
    %c0_6 = arith.constant 0 : index
    %c0_7 = arith.constant 0 : index
    %c0_8 = arith.constant 0 : index
    %17 = vector.load %arg3[%c0_6, %c0_7, %c0_8] : memref<1x4x1xf32, #tpu.memory_space<vmem>>, vector<1x4x1xf32>
    %18 = vector.broadcast %17 : vector<1x4x1xf32> to vector<1x4x256xf32>
    %19 = arith.mulf %16, %18 : vector<1x4x256xf32>
    %c0_9 = arith.constant 0 : index
    %c0_10 = arith.constant 0 : index
    %c0_11 = arith.constant 0 : index
    %20 = vector.load %arg4[%c0_9, %c0_10, %c0_11] : memref<1x4x1xf32, #tpu.memory_space<vmem>>, vector<1x4x1xf32>
    %21 = vector.broadcast %20 : vector<1x4x1xf32> to vector<1x4x256xf32>
    %22 = arith.addf %19, %21 : vector<1x4x256xf32>
    %c0_12 = arith.constant 0 : index
    %c0_13 = arith.constant 0 : index
    %c0_14 = arith.constant 0 : index
    %23 = vector.load %arg5[%c0_12, %c0_13, %c0_14] : memref<1x4x256xf32, #tpu.memory_space<vmem>>, vector<1x4x256xf32>
    tpu.vector_store %arg5[%c0_12, %c0_13, %c0_14], %22 {strides = array<i32>} : memref<1x4x256xf32, #tpu.memory_space<vmem>>, vector<1x4x256xf32>,
    return
  }
  func.func @transform_0(%arg0: i32, %arg1: i32) -> (i32, i32, i32) {
    %c0_i32 = arith.constant 0 : i32
    %c0_i32_0 = arith.constant 0 : i32
    return %arg0, %c0_i32, %arg1 : i32, i32, i32
  }
  func.func @transform_1(%arg0: i32, %arg1: i32) -> (i32, i32, i32) {
    %c0_i32 = arith.constant 0 : i32
    %c0_i32_0 = arith.constant 0 : i32
    %c0_i32_1 = arith.constant 0 : i32
    %c0_i32_2 = arith.constant 0 : i32
    return %c0_i32, %c0_i32_0, %c0_i32_1 : i32, i32, i32
  }
  func.func @transform_2(%arg0: i32, %arg1: i32) -> (i32, i32, i32) {
    %c0_i32 = arith.constant 0 : i32
    %c0_i32_0 = arith.constant 0 : i32
    %c0_i32_1 = arith.constant 0 : i32
    %c0_i32_2 = arith.constant 0 : i32
    return %c0_i32, %c0_i32_0, %c0_i32_1 : i32, i32, i32
  }
  func.func @transform_3(%arg0: i32, %arg1: i32) -> (i32, i32, i32) {
    %c0_i32 = arith.constant 0 : i32
    %c0_i32_0 = arith.constant 0 : i32
    return %arg0, %c0_i32, %arg1 : i32, i32, i32
  }
}

</mosaic_0001>

<bundles_post_ra>
// kernel: layer_norm.1
= control target key start
LH: loop header
LB: loop body
LE: loop exit
PB: predicated region body
PF: predicated region fallthrough
CT: control target
= control target key end

     0   :  { %s491_s12 = smov 0   ;;  %s493_s13 = smov 0   ;;  %s543_s0 = inlined_call_operand.vmem [shape: f32[2,4,256], index: 0, kind: input, shape index: {}]   ;;  %s544_s1 = inlined_call_operand.vmem [shape: f32[1,4,1], index: 1, kind: input, shape index: {}]   ;;  %s545_s2 = inlined_call_operand.vmem [shape: f32[1,4,1], index: 2, kind: input, shape index: {}]   ;;  %s546_s3 = inlined_call_operand.vmem [shape: f32[2,4,256], index: 3, kind: output, shape index: {}]  }
   0x1   :  { %s495_s14 = smov 0  }
   0x2 LB: > { %s25_s15 = sadd.s32 1, %s463_s13  ;;  %p405_p0 = scmp.ge.s32.totalorder %s467_s14, 1  ;;  %s467_s14 = sphi %s495_s14, %s13_s14   ;;  %s463_s13 = sphi %s493_s13, %s548_s13   ;;  %s459_s12 = sphi %s491_s12, %s547_s12  }
   0x3   : > { %p27_p1 = scmp.ge.s32.totalorder %s25_s15, 2  ;;  %p158_p2 = scmp.lt.s32.totalorder %s467_s14, 3 }
   0x5   : > { %s550_s15 = smov (%p27_p1, %s25_s15), 0  ;;  %p159_p3 = pnand %p405_p0, %p158_p2 }
   0x6   : > { %p191_p4 = scmp.lt.s32.totalorder (!%p159_p3), %s459_s12, 1 }
   0x7   : > { %162 = sbr.rel (%p159_p3) target bundleno = 142 (0x8e), region = 32 }
   0xc   : > { %v291_v0 = vld [vmem:[%s544_s1] sm:$0xf]  ;;  %v469_v1 = vmov 0   ;;  %s552_s12 = smov (!%p191_p4, %s459_s12), 1  ;;  %vm217_vm0 = vcmask 1043456  }
   0xd   : > { %440 = vset.pattern.permute.xlu0 %v469_v1  ;;  %s412_s18 = sshll.u32 %s552_s12, 3  ;;  %v302_v2 = vld [vmem:[%s545_s2] sm:$0xf]  ;;  %v470_v59 = vmov 839922192  }
   0xe   : > { %294 = vperm.xlu0 %440, %v291_v0   ;;  %s198_s21 = scalar_lea.vmem %s543_s0, %s412_s18  ;;  %v297_v60 = vunpack.c.l.s4 %v470_v59  ;;  %s208_s26 = scalar_lea.vmem %s546_s3, %s412_s18 }
   0xf   : > { %v210_v3 = vld [vmem:[%s198_s21] sm:$0xff] }
  0x10   : > { %212 = vst [vmem:[#allocation1] ss:$2 sm:$0xff] %v210_v3  ;;  %v298_v0 = vunpack.c.0.s8 %v297_v60 }
  0x16   : > { %305 = vperm.xlu0 %440, %v302_v2  }
  0x17   : > { %v214_v4 = vld.sshfl [vmem:[#allocation1 + $0x8] sm:$0xff pattern:$0x75316420]  ;;  %v213_v6 = vld.sshfl [vmem:[#allocation1] sm:$0xff pattern:$0x75316420] }
  0x18   : > { %v225_v5 = vsel %vm217_vm0, %v214_v4, 0.0  ;;  %v218_v8 = vsel %vm217_vm0, %v213_v6, 0.0 }
  0x19   : > { %v226_v7 = vrot.slane %v225_v5, 4  ;;  %v219_v9 = vrot.slane %v218_v8, 4 }
  0x1b   : > { %v227_v10 = vadd.f32 %v226_v7, %v225_v5  ;;  %v220_v11 = vadd.f32 %v219_v9, %v218_v8 }
  0x1d   : > { %v228_v12 = vrot.slane %v227_v10, 2  ;;  %v221_v13 = vrot.slane %v220_v11, 2 }
  0x1f   : > { %v229_v14 = vadd.f32 %v228_v12, %v227_v10  ;;  %v222_v15 = vadd.f32 %v221_v13, %v220_v11 }
  0x21   : > { %v230_v16 = vrot.slane %v229_v14, 1  ;;  %v223_v17 = vrot.slane %v222_v15, 1 }
  0x23   : > { %v231_v18 = vadd.f32 %v230_v16, %v229_v14  ;;  %v224_v19 = vadd.f32 %v223_v17, %v222_v15 }
  0x25   : > { %v233_v20 = vmul.f32 0.25, %v231_v18  ;;  %v232_v21 = vmul.f32 0.25, %v224_v19 }
  0x27   : > { %v236_v22 = vrot.slane %v233_v20, 4 }
  0x29   : > { %v237_v23 = vsel %vm217_vm0, %v232_v21, %v236_v22 }
  0x2a   : > { %v239_v24 = vsub.f32 %v210_v3, %v237_v23 }
  0x2c   : > { %v240_v25 = vmul.f32 %v239_v24, %v239_v24 }
  0x2e   : > { %242 = vst [vmem:[#allocation1] ss:$2 sm:$0xff] %v240_v25 }
  0x35   : > { %v244_v26 = vld.sshfl [vmem:[#allocation1 + $0x8] sm:$0xff pattern:$0x75316420]  ;;  %v243_v28 = vld.sshfl [vmem:[#allocation1] sm:$0xff pattern:$0x75316420] }
  0x36   : > { %v254_v27 = vsel %vm217_vm0, %v244_v26, 0.0  ;;  %v247_v30 = vsel %vm217_vm0, %v243_v28, 0.0 }
  0x37   : > { %v255_v29 = vrot.slane %v254_v27, 4  ;;  %v248_v31 = vrot.slane %v247_v30, 4 }
  0x39   : > { %v256_v32 = vadd.f32 %v255_v29, %v254_v27  ;;  %v249_v33 = vadd.f32 %v248_v31, %v247_v30 }
  0x3b   : > { %v257_v34 = vrot.slane %v256_v32, 2  ;;  %v250_v35 = vrot.slane %v249_v33, 2 }
  0x3d   : > { %v258_v36 = vadd.f32 %v257_v34, %v256_v32  ;;  %v251_v37 = vadd.f32 %v250_v35, %v249_v33 }
  0x3f   : > { %v259_v38 = vrot.slane %v258_v36, 1  ;;  %v252_v39 = vrot.slane %v251_v37, 1 }
  0x41   : > { %v260_v40 = vadd.f32 %v259_v38, %v258_v36  ;;  %v253_v41 = vadd.f32 %v252_v39, %v251_v37 }
  0x43   : > { %v262_v42 = vmul.f32 0.25, %v260_v40  ;;  %v261_v43 = vmul.f32 0.25, %v253_v41 }
  0x45   : > { %v264_v44 = vadd.f32 1e-06, %v262_v42  ;;  %v263_v45 = vadd.f32 1e-06, %v261_v43 }
  0x47   : > { %441 = vrsqrt.f32 %v264_v44  ;;  %vm281_vm1 = vweird.f32 %v264_v44  ;;  %vm271_vm4 = vweird.f32 %v263_v45 }
  0x48   : > { %443 = vrsqrt.f32 %v263_v45 }
  0x4d   : > { %v442_v46 = vpop.eup %441 }
  0x4e   : > { %v276_v47 = vmul.f32 %v442_v46, %v264_v44  ;;  %v444_v48 = vpop.eup %443  ;;  %vm282_vm2 = vweird.f32 %v442_v46 }
  0x4f   : > { %v266_v49 = vmul.f32 %v444_v48, %v263_v45  ;;  %vm283_vm3 = vmor %vm281_vm1, %vm282_vm2  ;;  %vm272_vm5 = vweird.f32 %v444_v48 }
  0x50   : > { %v277_v50 = vmul.f32 %v442_v46, %v276_v47  ;;  %vm273_vm6 = vmor %vm271_vm4, %vm272_vm5 }
  0x51   : > { %v267_v51 = vmul.f32 %v444_v48, %v266_v49 }
  0x52   : > { %v278_v52 = vmul.f32 0.5, %v277_v50 }
  0x53   : > { %v268_v53 = vmul.f32 0.5, %v267_v51 }
  0x54   : > { %v279_v54 = vsub.f32 1.5, %v278_v52 }
  0x55   : > { %v269_v55 = vsub.f32 1.5, %v268_v53 }
  0x56   : > { %v280_v56 = vmul.f32 %v442_v46, %v279_v54 }
  0x57   : > { %v270_v57 = vmul.f32 %v444_v48, %v269_v55 }
  0x58   : > { %v284_v58 = vsel %vm283_vm3, %v442_v46, %v280_v56 }
  0x59   : > { %v287_v61 = vrot.slane %v284_v58, 4  ;;  %v274_v62 = vsel %vm273_vm6, %v444_v48, %v270_v57 }
  0x5b   : > { %v288_v1 = vsel %vm217_vm0, %v274_v62, %v287_v61 }
  0x5c   : > { %v290_v2 = vmul.f32 %v288_v1, %v239_v24 }
  0x80   : > { %v295_v63 = vpop.permute.xlu0 %294 }
  0x81   : > { %v299_v3 = vperm.slane %v295_v63, %v298_v0 }
  0x83   : > { %v301_v5 = vmul.f32 %v299_v3, %v290_v2 }
  0x88   : > { %v306_v4 = vpop.permute.xlu0 %305 }
  0x89   : > { %v310_v6 = vperm.slane %v306_v4, %v298_v0 }
  0x8b   : > { %v312_v7 = vadd.f32 %v310_v6, %v301_v5 }
  0x8d   : > { %313 = vst [vmem:[%s208_s26] sm:$0xff] %v312_v7 }
  0x8e PF: > { %s13_s14 = sadd.s32 1, %s467_s14   ;;  %s547_s12 = smov %s463_s13 }
  0x8f   : > { %p10_p5 = scmp.ge.s32.totalorder %s13_s14, 4   ;;  %s548_s13 = smov %s550_s15 }
  0x91   :  { %12 = sbr.rel (!%p10_p5) target bundleno = 2 (0x2), region = 62 }

</bundles_post_ra>
